<compile_context>
chip_gen: v6e
topology: v6e:2x2x1
jax: 0.10.0
libtpu: 0.0.40
codegen_flags: <defaults>
</compile_context>

<pallas_src>
import jax
import jax.numpy as jnp
from jax.experimental import pallas as pl
from jax.experimental.pallas import tpu as pltpu


def _fusion_kernel(coef_ref, x1_ref, x2_ref, o_ref):
    # coef_ref: SMEM float32 [2] = [1/(1+w), w/(1+w)] (precomputed in wrapper).
    c1 = coef_ref[0]
    c2 = coef_ref[1]
    o_ref[...] = (x1_ref[...].astype(jnp.float32) * c1
                  + x2_ref[...].astype(jnp.float32) * c2).astype(o_ref.dtype)


def _pick_lanes(total, max_lanes=2048):
    """Largest multiple of 128 that divides `total`, capped at max_lanes (0 if none)."""
    for k in range(max_lanes // 128, 0, -1):
        lanes = 128 * k
        if total % lanes == 0:
            return lanes
    return 0


def fusion(x1, x2, w, *, target_tile_bytes=4 << 20, donate_x1=False):
    """x1 * 1/(1+w) + x2 * w/(1+w), elementwise."""
    assert x1.shape == x2.shape and x1.dtype == x2.dtype
    orig_shape = x1.shape
    out_dtype = x1.dtype
    total = x1.size
    itemsize = jnp.dtype(out_dtype).itemsize

    # Blend coefficients: computed once, in float32, outside the kernel.
    w32 = jnp.asarray(w, dtype=jnp.float32)
    inv = 1.0 / (1.0 + w32)
    coefs = jnp.stack([inv, w32 * inv])          # shape (2,), float32

    # --- Lay inputs out as a lane-dense (rows, lanes) slab WITHOUT copying. ---
    x1_flat = x1.reshape(-1)                     # free view (contiguous)
    x2_flat = x2.reshape(-1)
    lanes = _pick_lanes(total)
    padded_total = total
    if lanes == 0:
        # Rare fallback: element count not a multiple of 128 — pad the tail.
        # TODO(synk): this path still materializes a copy of both inputs.
        padded_total = pl.cdiv(total, 128) * 128
        x1_flat = jnp.pad(x1_flat, (0, padded_total - total))
        x2_flat = jnp.pad(x2_flat, (0, padded_total - total))
        lanes = _pick_lanes(padded_total)
    rows = padded_total // lanes
    x1_2d = x1_flat.reshape(rows, lanes)
    x2_2d = x2_flat.reshape(rows, lanes)

    # --- Row tiling: ~4 MiB per stream per buffer, multiple of 8 rows. ---
    tile_rows = max(8, (target_tile_bytes // (lanes * itemsize)) // 8 * 8)
    if rows < 64:
        # Tiny input: single full-extent block (launch overhead dominates anyway).
        block_rows = rows
    else:
        # Split into >= 2 blocks so v7x's two TensorCores both get work; cap at
        # tile_rows for streaming. Ragged last block is masked on store by Pallas.
        half = -(-rows // 2)                      # ceil(rows / 2)
        block_rows = min(tile_rows, -(-half // 8) * 8)
    grid = (pl.cdiv(rows, block_rows),)

    cost = pl.CostEstimate(flops=3 * total,
                           transcendentals=0,
                           bytes_accessed=3 * total * itemsize)

    extra_kwargs = {}
    if donate_x1:
        # Inputs are (coefs, x1_2d, x2_2d); output 0 matches x1_2d's shape/dtype.
        # Only enable when the caller no longer needs x1.
        extra_kwargs["input_output_aliases"] = {1: 0}

    out = pl.pallas_call(
        _fusion_kernel,
        out_shape=jax.ShapeDtypeStruct((rows, lanes), out_dtype),
        grid_spec=pltpu.PrefetchScalarGridSpec(
            num_scalar_prefetch=1,
            grid=grid,
            in_specs=[
                pl.BlockSpec((block_rows, lanes), lambda i, c: (i, 0)),
                pl.BlockSpec((block_rows, lanes), lambda i, c: (i, 0)),
            ],
            out_specs=pl.BlockSpec((block_rows, lanes), lambda i, c: (i, 0)),
        ),
        compiler_params=pltpu.CompilerParams(
            dimension_semantics=("parallel",),
            vmem_limit_bytes=32 << 20,     # fits v7x physical VMEM, lifts v5e default
        ),
        cost_estimate=cost,
        **extra_kwargs,
    )(coefs, x1_2d, x2_2d)

    if padded_total != total:
        out = out.reshape(-1)[:total]
    return out.reshape(orig_shape)


if __name__ == "__main__":
    key = jax.random.PRNGKey(0)
    k1, k2 = jax.random.split(key)
    # NCHW inputs, consistent with typical use of Fusion on conv features.
    x1 = jax.random.normal(k1, (2, 4, 16, 16), dtype=jnp.float32)
    x2 = jax.random.normal(k2, (2, 4, 16, 16), dtype=jnp.float32)

    # Parameter init matching nn.Parameter(torch.tensor(0.1)).
    w = jnp.float32(0.1)

    out = fusion(x1, x2, w)
    out = jax.block_until_ready(out)

    # Reference check in plain JAX (same formula as the PyTorch module).
    ref = x1 * 1.0 / (1.0 + w) + x2 * w / (w + 1.0)
    assert out.shape == x1.shape and out.dtype == x1.dtype
    assert jnp.allclose(out, ref, atol=1e-6, rtol=1e-6), "mismatch vs reference"

    print("KERNEL_OK")
</pallas_src>

<mosaic_0001>
module attributes {stable_mosaic.version = 11 : i64} {
  func.func @_fusion_kernel(%arg0: i32, %arg1: memref<2xf32, #tpu.memory_space<smem>>, %arg2: memref<1x2048xf32, #tpu.memory_space<vmem>>, %arg3: memref<1x2048xf32, #tpu.memory_space<vmem>>, %arg4: memref<1x2048xf32, #tpu.memory_space<vmem>>) attributes {dimension_semantics = [#tpu.dimension_semantics<parallel>], iteration_bounds = array<i64: 1>, scalar_prefetch = 1 : i64, scratch_operands = 0 : i64, tpu.core_type = #tpu.core_type<tc>, window_params = [{transform_indices = @transform_0, window_bounds = array<i64: 1, 2048>}, {transform_indices = @transform_1, window_bounds = array<i64: 1, 2048>}, {transform_indices = @transform_2, window_bounds = array<i64: 1, 2048>}]} {
    %c0 = arith.constant 0 : index
    %0 = memref.load %arg1[%c0] : memref<2xf32, #tpu.memory_space<smem>>
    %c1 = arith.constant 1 : index
    %1 = memref.load %arg1[%c1] : memref<2xf32, #tpu.memory_space<smem>>
    %c0_0 = arith.constant 0 : index
    %c0_1 = arith.constant 0 : index
    %2 = vector.load %arg2[%c0_0, %c0_1] : memref<1x2048xf32, #tpu.memory_space<vmem>>, vector<1x2048xf32>
    %3 = vector.broadcast %0 : f32 to vector<1x2048xf32>
    %4 = arith.mulf %2, %3 : vector<1x2048xf32>
    %c0_2 = arith.constant 0 : index
    %c0_3 = arith.constant 0 : index
    %5 = vector.load %arg3[%c0_2, %c0_3] : memref<1x2048xf32, #tpu.memory_space<vmem>>, vector<1x2048xf32>
    %6 = vector.broadcast %1 : f32 to vector<1x2048xf32>
    %7 = arith.mulf %5, %6 : vector<1x2048xf32>
    %8 = arith.addf %4, %7 : vector<1x2048xf32>
    %c0_4 = arith.constant 0 : index
    %c0_5 = arith.constant 0 : index
    %9 = vector.load %arg4[%c0_4, %c0_5] : memref<1x2048xf32, #tpu.memory_space<vmem>>, vector<1x2048xf32>
    tpu.vector_store %arg4[%c0_4, %c0_5], %8 {strides = array<i32>} : memref<1x2048xf32, #tpu.memory_space<vmem>>, vector<1x2048xf32>,
    return
  }
  func.func @transform_0(%arg0: i32, %arg1: memref<2xf32, #tpu.memory_space<smem>>) -> (i32, i32) {
    %c0_i32 = arith.constant 0 : i32
    %c0_i32_0 = arith.constant 0 : i32
    return %arg0, %c0_i32 : i32, i32
  }
  func.func @transform_1(%arg0: i32, %arg1: memref<2xf32, #tpu.memory_space<smem>>) -> (i32, i32) {
    %c0_i32 = arith.constant 0 : i32
    %c0_i32_0 = arith.constant 0 : i32
    return %arg0, %c0_i32 : i32, i32
  }
  func.func @transform_2(%arg0: i32, %arg1: memref<2xf32, #tpu.memory_space<smem>>) -> (i32, i32) {
    %c0_i32 = arith.constant 0 : i32
    %c0_i32_0 = arith.constant 0 : i32
    return %arg0, %c0_i32 : i32, i32
  }
}

</mosaic_0001>

<bundles_post_ra>
// kernel: tpu_custom_call.1
= control target key start
LH: loop header
LB: loop body
LE: loop exit
PB: predicated region body
PF: predicated region fallthrough
CT: control target
= control target key end

     0   :  { %s154_s12 = smov [#allocation3]   ;;  %s190_s0 = inlined_call_operand.hbm [shape: f32[2], index: 0, kind: input, shape index: {}]   ;;  %s191_s1 = inlined_call_operand.hbm [shape: f32[1,2048], index: 1, kind: input, shape index: {}]   ;;  %s192_s2 = inlined_call_operand.hbm [shape: f32[1,2048], index: 2, kind: input, shape index: {}]   ;;  %s193_s3 = inlined_call_operand.hbm [shape: f32[1,2048], index: 3, kind: output, shape index: {}]  }
   0x1   :  { %9 = dma.hbm_to_smem %s190_s0, 16, %s154_s12, [#allocation2] }
   0x2   :  { %146 = dma.done.wait [#allocation2], 16 }
   0x3   :  { %147 = vsyncadd [#allocation2], 4294967280 }
   0x4   :  { %11 = sfence }
   0x5   :  { %12 = vsyncpa [#allocation5], 0 }
   0x6   :  { %13 = vsyncpa [#allocation8], 0 }
   0x7   :  { %14 = vsyncpa [#allocation6], 0  ;;  %s155_s15 = smov [#allocation4]   ;;  %s156_s17 = smov [#allocation7]  }
   0x8   :  { %s21_s16 = sshll.u32 %s155_s15, 4  ;;  %s31_s18 = sshll.u32 %s156_s17, 4  ;;  %s22_s16 = int_to_ptr.vmem [resolvable:$true] %s21_s16  ;;  %s32_s18 = int_to_ptr.vmem [resolvable:$true] %s31_s18 }
   0x9   :  { %s94_s19 = scalar_lea.vmem %s22_s16, 256  ;;  %p99_p1 = scmp.lt.s32.totalorder %s22_s16, %s22_s16 }
   0xa   :  { %p95_p0 = scmp.ne.s32.totalorder %s22_s16, %s94_s19  ;;  %p100_p2 = scmp.lt.s32.totalorder %s94_s19, %s94_s19 }
   0xc   :  { %p101_p3 = por %p100_p2, %p99_p1 }
   0xe   :  { %p102_p4 = pnand %p101_p3, %p95_p0 }
  0x10   :  { %105 = shalt.err (!%p102_p4)
}
  0x11   :  { %24 = dma.hbm_to_vmem [thread:$0]  %s191_s1, 256, %s22_s16, [#allocation5]  }
  0x12   :  { %s114_s21 = scalar_lea.vmem %s32_s18, 256  ;;  %p119_p6 = scmp.lt.s32.totalorder %s32_s18, %s32_s18 }
  0x13   :  { %p115_p5 = scmp.ne.s32.totalorder %s32_s18, %s114_s21  ;;  %p120_p7 = scmp.lt.s32.totalorder %s114_s21, %s114_s21 }
  0x15   :  { %p121_p8 = por %p120_p7, %p119_p6 }
  0x17   :  { %p122_p9 = pnand %p121_p8, %p115_p5 }
  0x19   :  { %125 = shalt.err (!%p122_p9)
}
  0x1a   :  { %34 = dma.hbm_to_vmem [thread:$0]  %s192_s2, 256, %s32_s18, [#allocation8]  }
  0x1b   :  { %148 = dma.done.wait [#allocation5], 256  }
  0x1c   :  { %149 = vsyncadd [#allocation5], 4294967040 }
  0x1d   :  { %150 = dma.done.wait [#allocation8], 256  }
  0x1e   :  { %151 = vsyncadd [#allocation8], 4294967040  ;;  %s41_s24 = sld [smem:[#allocation3]]  ;;  %v43_v0 = vld [vmem:[#allocation4] sm:$0xff]  ;;  %v48_v2 = vld [vmem:[#allocation7] sm:$0xff]  ;;  %s157_s1 = smov [#allocation9]  }
  0x1f   :  { %s73_s25 = sld [smem:[#allocation3 + $0x1]]  ;;  %v44_v3 = vld [vmem:[#allocation4 + $0x8] sm:$0xff]  ;;  %v49_v7 = vld [vmem:[#allocation7 + $0x8] sm:$0xff]  ;;  %s63_s26 = sshll.u32 %s157_s1, 4  ;;  %s64_s26 = int_to_ptr.vmem [resolvable:$true] %s63_s26 }
  0x20   :  { %s126_s2 = scalar_lea.vmem %s64_s26, 256  ;;  %p131_p11 = scmp.lt.s32.totalorder %s64_s26, %s64_s26 }
  0x21   :  { %p127_p10 = scmp.ne.s32.totalorder %s64_s26, %s126_s2  ;;  %p132_p12 = scmp.lt.s32.totalorder %s126_s2, %s126_s2 }
  0x23   :  { %p133_p13 = por %p132_p12, %p131_p11 }
  0x24   :  { %v45_v1 = vstv %s41_s24 }
  0x25   :  { %v46_v4 = vmul.f32 %v45_v1, %v43_v0  ;;  %v50_v5 = vstv %s73_s25  ;;  %v47_v6 = vmul.f32 %v45_v1, %v44_v3  ;;  %p134_p0 = pnand %p133_p13, %p127_p10 }
  0x26   :  { %v51_v8 = vmul.f32 %v50_v5, %v48_v2  ;;  %v52_v9 = vmul.f32 %v50_v5, %v49_v7 }
  0x28   :  { %v53_v10 = vadd.f32 %v51_v8, %v46_v4  ;;  %v54_v11 = vadd.f32 %v52_v9, %v47_v6 }
  0x2a   :  { %55 = vst [vmem:[#allocation9] sm:$0xff] %v53_v10  ;;  %56 = vst [vmem:[#allocation9 + $0x8] sm:$0xff] %v54_v11 }
  0x2b   :  { %137 = shalt.err (!%p134_p0)
}
  0x2c   :  { %66 = dma.vmem_to_hbm [thread:$0]  %s64_s26, 256, %s193_s3, [#allocation6]  }
  0x2d   :  { %152 = dma.done.wait [#allocation6], 256  }
  0x2e   :  { %153 = vsyncadd [#allocation6], 4294967040 }
  0x2f   :  { %70 = vsyncpa [#allocation5], 1 }
  0x30   :  { %71 = vsyncpa [#allocation8], 1 }
  0x31   :  { %72 = vsyncpa [#allocation6], 1 }

</bundles_post_ra>
